<compile_context>
chip_gen: v7x
topology: tpu7x:2x2x1
jax: 0.10.0
libtpu: 0.0.40
codegen_flags: <defaults>
</compile_context>

<pallas_src>
import functools
import math

import jax
import jax.numpy as jnp
from jax.experimental import pallas as pl
from jax.experimental.pallas import tpu as pltpu


# ----------------------------------------------------------------------------
# Hardware-aware budgets.
# ----------------------------------------------------------------------------
@functools.lru_cache(maxsize=None)
def _device_kind():
    try:
        return jax.devices()[0].device_kind
    except Exception:
        return "unknown"


@functools.lru_cache(maxsize=None)
def _tile_budget():
    """Returns (input_block_budget_bytes, vmem_limit_bytes)."""
    cap = None
    try:
        cap = pltpu.get_tpu_info().vmem_capacity_bytes
    except Exception:
        cap = None
    if cap is None:
        cap = (64 << 20) if "v7" in _device_kind().lower() else (128 << 20)
    if cap <= (64 << 20):
        # v7x-class: 64 MiB VMEM/TC.  Live set per step ~= 2x padded input block
        # (double buffer) + 1x lhs temp from the in-VMEM im2col + small outputs.
        return 4 << 20, 44 << 20
    # v5e / v6e: 128 MiB physical; raise the (16/32 MiB) default scoped limit.
    return 6 << 20, 72 << 20


# ----------------------------------------------------------------------------
# Fused kernel: im2col + GEMM + bias + NCDHW write in one pallas_call.
# ----------------------------------------------------------------------------
def _fused_patch_embed_kernel(x_ref, w_ref, b_ref, o_ref, *,
                              C, pd, ph, pw, tDo, Ho, Wo):
    # x_ref: (C, tDo*pd*H*W)  -- one batch, tDo output-depth slabs, lane-dense
    # w_ref: (K, N)   b_ref: (1, N)   o_ref: (N, tDo*Ho*Wo)  (NCDHW block)
    K = C * pd * ph * pw
    R = tDo * Ho * Wo
    xb = x_ref[...].reshape(C, tDo, pd, Ho, ph, Wo, pw)
    # In-VMEM im2col: output-pixel dims (tDo, Ho, Wo) -> rows, kernel dims
    # (C, pd, ph, pw) -> K lanes.  Rides XLU/vld/vst slots, which have slack in
    # an HBM-bound kernel; the weight is pre-permuted to the same K order.
    lhs = jnp.transpose(xb, (1, 3, 5, 0, 2, 4, 6)).reshape(R, K)
    acc = jnp.dot(lhs, w_ref[...], preferred_element_type=jnp.float32) + b_ref[...]
    # Write NCDHW directly: (R, N) -> (N, R) is a cheap 2-D XLU transpose and
    # removes the old XLA epilogue transpose (one extra HBM read+write of out).
    o_ref[...] = jnp.transpose(acc).astype(o_ref.dtype)


def _pick_tdo(B, C, Do, Ho, Wo, pd, ph, pw, itemsize, budget):
    """Largest divisor tDo of Do such that
       - the input block (C, tDo*pd*H*W) and output block (N, tDo*Ho*Wo) obey
         the (8, 128) trailing-dim rule (mult of 128 or full extent),
       - the input block fits the budget (else the smallest legal tile),
       - >= 2 total grid steps when possible (v7x dual-TC balance)."""
    lane_in = pd * Ho * ph * Wo * pw          # = pd*H*W
    lane_out = Ho * Wo

    def legal(t):
        if Do % t:
            return False
        ok_in = (t == Do) or ((t * lane_in) % 128 == 0)
        ok_out = (t == Do) or ((t * lane_out) % 128 == 0)
        return ok_in and ok_out

    legal_ts = [t for t in range(1, Do + 1) if legal(t)]   # t == Do always legal
    fits = [t for t in legal_ts if C * t * lane_in * itemsize <= budget]
    cands = fits if fits else [min(legal_ts)]
    multi = [t for t in cands if B * (Do // t) >= 2]
    pool = multi if multi else cands
    return max(pool)


def _patch_embed_3d_fused(x, weight, bias, patch_size):
    B, C, D, H, W = x.shape
    pd, ph, pw = patch_size
    N = weight.shape[0]
    Do, Ho, Wo = D // pd, H // ph, W // pw
    K = C * pd * ph * pw
    M = B * Do * Ho * Wo
    itemsize = jnp.dtype(x.dtype).itemsize
    budget, vmem_limit = _tile_budget()

    tDo = _pick_tdo(B, C, Do, Ho, Wo, pd, ph, pw, itemsize, budget)
    nDblk = Do // tDo
    lane_in = pd * H * W
    R = tDo * Ho * Wo

    # Free views / tiny operands (no HBM pass over x).
    x3 = x.reshape(B, C, D * H * W)                       # lane dim stays dense
    # NOTE: weight is cast to x.dtype (mixed precision when x is bf16);
    # accumulation stays f32 inside the kernel.
    w2 = weight.reshape(N, K).T.astype(x.dtype)           # (K, N)
    b2 = bias.reshape(1, N).astype(jnp.float32)

    grid = (B * nDblk,)   # single flat "parallel" axis -> balanced megacore split

    out3 = pl.pallas_call(
        functools.partial(_fused_patch_embed_kernel,
                          C=C, pd=pd, ph=ph, pw=pw, tDo=tDo, Ho=Ho, Wo=Wo),
        out_shape=jax.ShapeDtypeStruct((B, N, Do * Ho * Wo), x.dtype),
        grid_spec=pltpu.PrefetchScalarGridSpec(
            num_scalar_prefetch=0,
            grid=grid,
            in_specs=[
                # x3: one batch, tDo depth-slabs; each channel's slab is one
                # long contiguous HBM run -> dense, large DMA bursts.
                pl.BlockSpec((None, C, tDo * lane_in),
                             lambda g: (g // nDblk, 0, g % nDblk)),
                pl.BlockSpec((K, N), lambda g: (0, 0)),   # resident weight
                pl.BlockSpec((1, N), lambda g: (0, 0)),   # bias
            ],
            out_specs=pl.BlockSpec((None, N, R),
                                   lambda g: (g // nDblk, 0, g % nDblk)),
        ),
        compiler_params=pltpu.CompilerParams(
            dimension_semantics=("parallel",),
            vmem_limit_bytes=vmem_limit),
        cost_estimate=pl.CostEstimate(
            flops=2 * M * K * N,
            transcendentals=0,
            bytes_accessed=itemsize * (M * K + K * N + M * N) + 4 * N),
    )(x3, w2, b2)

    # Free, contiguous reshape -> NCDHW.  No XLA transpose pass.
    return out3.reshape(B, N, Do, Ho, Wo)


# ----------------------------------------------------------------------------
# Emergency fallback: XLA im2col + Pallas tiled GEMM (always lowers; ~3x HBM
# traffic of the fused path -- only used if the fused lowering fails).
# ----------------------------------------------------------------------------
def _matmul_bias_kernel(p_ref, w_ref, b_ref, o_ref):
    acc = jnp.dot(p_ref[...], w_ref[...], preferred_element_type=jnp.float32)
    o_ref[...] = (acc + b_ref[...]).astype(o_ref.dtype)


def _pick_tm(M, K, itemsize, budget):
    cap = max(8, min(M, budget // max(1, K * itemsize)))
    if M >= 16:
        cap = min(cap, M // 2)        # keep >=2 steps for v7x megacore
    for t in range(cap, 0, -1):
        if M % t == 0 and (t % 8 == 0 or t == M):
            return t
    return M


def _patch_embed_3d_unfused(x, weight, bias, patch_size):
    B, C, D, H, W = x.shape
    pd, ph, pw = patch_size
    N = weight.shape[0]
    Do, Ho, Wo = D // pd, H // ph, W // pw
    K = C * pd * ph * pw
    M = B * Do * Ho * Wo
    itemsize = jnp.dtype(x.dtype).itemsize
    budget, vmem_limit = _tile_budget()

    # im2col in XLA (materializes `patches` in HBM: one extra read+write of x).
    xp = x.reshape(B, C, Do, pd, Ho, ph, Wo, pw).transpose(0, 2, 4, 6, 1, 3, 5, 7)
    patches = xp.reshape(M, K)
    w2 = weight.reshape(N, K).T.astype(x.dtype)
    b2 = bias.reshape(1, N).astype(jnp.float32)

    tm = _pick_tm(M, K, itemsize, budget)

    out2d = pl.pallas_call(
        _matmul_bias_kernel,
        out_shape=jax.ShapeDtypeStruct((M, N), x.dtype),
        grid_spec=pltpu.PrefetchScalarGridSpec(
            num_scalar_prefetch=0,
            grid=(M // tm,),
            in_specs=[
                pl.BlockSpec((tm, K), lambda i: (i, 0)),
                pl.BlockSpec((K, N), lambda i: (0, 0)),
                pl.BlockSpec((1, N), lambda i: (0, 0)),
            ],
            out_specs=pl.BlockSpec((tm, N), lambda i: (i, 0)),
        ),
        compiler_params=pltpu.CompilerParams(
            dimension_semantics=("parallel",),
            vmem_limit_bytes=vmem_limit),
        cost_estimate=pl.CostEstimate(
            flops=2 * M * K * N,
            transcendentals=0,
            bytes_accessed=itemsize * (M * K + K * N + M * N) + 4 * N),
    )(patches, w2, b2)

    return out2d.reshape(B, Do, Ho, Wo, N).transpose(0, 4, 1, 2, 3)


# ----------------------------------------------------------------------------
# Path selection: probe-compile the fused path once per (device kind, shapes,
# dtypes); reuse the compiled executable if it lowers, else fall back.
# ----------------------------------------------------------------------------
@functools.lru_cache(maxsize=None)
def _fused_executable(device_kind, x_shape, x_dtype, w_shape, w_dtype,
                      b_shape, b_dtype, patch_size):
    del device_kind  # part of the cache key only (multi-generation processes)
    try:
        fn = jax.jit(functools.partial(_patch_embed_3d_fused,
                                       patch_size=patch_size))
        return fn.lower(
            jax.ShapeDtypeStruct(x_shape, jnp.dtype(x_dtype)),
            jax.ShapeDtypeStruct(w_shape, jnp.dtype(w_dtype)),
            jax.ShapeDtypeStruct(b_shape, jnp.dtype(b_dtype)),
        ).compile()
    except Exception:
        # Mosaic could not lower the in-kernel im2col relayout on this
        # jax/libtpu version (or VMEM rejection): use the unfused fallback.
        return None


@functools.lru_cache(maxsize=None)
def _unfused_jit(patch_size):
    return jax.jit(functools.partial(_patch_embed_3d_unfused,
                                     patch_size=patch_size))


def patch_embed_3d(x, weight, bias, patch_size=(4, 4, 4), compute_dtype=None):
    """
    x:      (B, C, D, H, W)
    weight: (embed_dim, C, pd, ph, pw)   (PyTorch Conv3d weight layout)
    bias:   (embed_dim,)
    compute_dtype: optional dtype for the GEMM inputs.  The weight is always
        cast to x's (possibly casted) dtype; pass jnp.bfloat16 on v6e/v7x to
        halve HBM read traffic.  Accumulation stays float32; the output has
        the compute dtype.
    returns (B, embed_dim, D//pd, H//ph, W//pw)
    """
    B, C, D, H, W = x.shape
    patch_size = tuple(int(p) for p in patch_size)
    pd, ph, pw = patch_size
    assert D % pd == 0 and H % ph == 0 and W % pw == 0

    if compute_dtype is not None:
        x = x.astype(compute_dtype)

    compiled = _fused_executable(
        _device_kind(),
        tuple(x.shape), jnp.dtype(x.dtype).name,
        tuple(weight.shape), jnp.dtype(weight.dtype).name,
        tuple(bias.shape), jnp.dtype(bias.dtype).name,
        patch_size)
    if compiled is not None:
        return compiled(x, weight, bias)
    return _unfused_jit(patch_size)(x, weight, bias)


def init_params(key, in_chans=4, embed_dim=32, patch_size=(4, 4, 4)):
    """Deterministic Conv3d-style init (kaiming-uniform-ish, like PyTorch)."""
    pd, ph, pw = patch_size
    fan_in = in_chans * pd * ph * pw
    bound = 1.0 / math.sqrt(fan_in)
    kw, kb = jax.random.split(key)
    weight = jax.random.uniform(
        kw, (embed_dim, in_chans, pd, ph, pw), jnp.float32, -bound, bound)
    bias = jax.random.uniform(kb, (embed_dim,), jnp.float32, -bound, bound)
    return weight, bias


if __name__ == "__main__":
    key = jax.random.PRNGKey(0)
    k_x, k_p = jax.random.split(key)

    B, C, D, H, W = 2, 4, 16, 16, 16
    patch_size = (4, 4, 4)
    embed_dim = 32

    x = jax.random.normal(k_x, (B, C, D, H, W), jnp.float32)
    weight, bias = init_params(k_p, in_chans=C, embed_dim=embed_dim,
                               patch_size=patch_size)

    out = patch_embed_3d(x, weight, bias, patch_size=patch_size)
    out = jax.block_until_ready(out)
    assert out.shape == (B, embed_dim, D // 4, H // 4, W // 4), out.shape

    # Reference: XLA Conv3d (NCDHW, OIDHW) + bias.
    ref = jax.lax.conv_general_dilated(
        x, weight, window_strides=patch_size, padding="VALID",
        dimension_numbers=("NCDHW", "OIDHW", "NCDHW"),
    ) + bias.reshape(1, embed_dim, 1, 1, 1)
    ref = jax.block_until_ready(ref)

    assert jnp.allclose(out, ref, atol=1e-4, rtol=1e-4), float(
        jnp.max(jnp.abs(out - ref)))
    print("KERNEL_OK")
</pallas_src>

<mosaic_0001>
module attributes {stable_mosaic.version = 11 : i64} {
  func.func @_matmul_bias_kernel(%arg0: i32, %arg1: memref<64x256xf32, #tpu.memory_space<vmem>>, %arg2: memref<256x32xf32, #tpu.memory_space<vmem>>, %arg3: memref<1x32xf32, #tpu.memory_space<vmem>>, %arg4: memref<64x32xf32, #tpu.memory_space<vmem>>) attributes {dimension_semantics = [#tpu.dimension_semantics<parallel>], iteration_bounds = array<i64: 2>, scalar_prefetch = 0 : i64, scratch_operands = 0 : i64, tpu.core_type = #tpu.core_type<tc>, window_params = [{transform_indices = @transform_0, window_bounds = array<i64: 64, 256>}, {pipeline_mode = #tpu.pipeline_mode<synchronous>, transform_indices = @transform_1, window_bounds = array<i64: 256, 32>}, {pipeline_mode = #tpu.pipeline_mode<synchronous>, transform_indices = @transform_2, window_bounds = array<i64: 1, 32>}, {transform_indices = @transform_3, window_bounds = array<i64: 64, 32>}]} {
    %c0 = arith.constant 0 : index
    %c0_0 = arith.constant 0 : index
    %0 = vector.load %arg1[%c0, %c0_0] : memref<64x256xf32, #tpu.memory_space<vmem>>, vector<64x256xf32>
    %c0_1 = arith.constant 0 : index
    %c0_2 = arith.constant 0 : index
    %1 = vector.load %arg2[%c0_1, %c0_2] : memref<256x32xf32, #tpu.memory_space<vmem>>, vector<256x32xf32>
    %cst = arith.constant dense<0.000000e+00> : vector<64x32xf32>
    %2 = tpu.matmul %0, %1, %cst {dimension_numbers = #tpu.dot_dimension_numbers<[1], [0], [0], [1], [0, 0, 1, 1], [], []>} : vector<64x256xf32>, vector<256x32xf32>, vector<64x32xf32> -> vector<64x32xf32>
    %c0_3 = arith.constant 0 : index
    %c0_4 = arith.constant 0 : index
    %3 = vector.load %arg3[%c0_3, %c0_4] : memref<1x32xf32, #tpu.memory_space<vmem>>, vector<1x32xf32>
    %4 = vector.broadcast %3 : vector<1x32xf32> to vector<64x32xf32>
    %5 = arith.addf %2, %4 : vector<64x32xf32>
    %c0_5 = arith.constant 0 : index
    %c0_6 = arith.constant 0 : index
    %6 = vector.load %arg4[%c0_5, %c0_6] : memref<64x32xf32, #tpu.memory_space<vmem>>, vector<64x32xf32>
    tpu.vector_store %arg4[%c0_5, %c0_6], %5 {strides = array<i32>} : memref<64x32xf32, #tpu.memory_space<vmem>>, vector<64x32xf32>,
    return
  }
  func.func @transform_0(%arg0: i32) -> (i32, i32) {
    %c0_i32 = arith.constant 0 : i32
    %c0_i32_0 = arith.constant 0 : i32
    return %arg0, %c0_i32 : i32, i32
  }
  func.func @transform_1(%arg0: i32) -> (i32, i32) {
    %c0_i32 = arith.constant 0 : i32
    %c0_i32_0 = arith.constant 0 : i32
    %c0_i32_1 = arith.constant 0 : i32
    return %c0_i32, %c0_i32_0 : i32, i32
  }
  func.func @transform_2(%arg0: i32) -> (i32, i32) {
    %c0_i32 = arith.constant 0 : i32
    %c0_i32_0 = arith.constant 0 : i32
    %c0_i32_1 = arith.constant 0 : i32
    return %c0_i32, %c0_i32_0 : i32, i32
  }
  func.func @transform_3(%arg0: i32) -> (i32, i32) {
    %c0_i32 = arith.constant 0 : i32
    %c0_i32_0 = arith.constant 0 : i32
    return %arg0, %c0_i32 : i32, i32
  }
}

</mosaic_0001>

<bundles_post_ra>
// kernel: _patch_embed_3d_unfused.1
= control target key start
LH: loop header
LB: loop body
LE: loop exit
PB: predicated region body
PF: predicated region fallthrough
CT: control target
= control target key end

     0   :  { %8 = vsyncpa [#allocation3], 0  ;;  %s1155_s0 = inlined_call_operand.hbm [shape: f32[128,256], index: 0, kind: input, shape index: {}]   ;;  %s1156_s1 = inlined_call_operand.hbm [shape: f32[256,32], index: 1, kind: input, shape index: {}]   ;;  %s1157_s2 = inlined_call_operand.hbm [shape: f32[1,32], index: 2, kind: input, shape index: {}]   ;;  %s1158_s3 = inlined_call_operand.hbm [shape: f32[128,32], index: 3, kind: output, shape index: {}]  }
   0x1   :  { %10 = vsyncpa [#allocation3 + $0x1], 0 }
   0x2   :  { %11 = vsyncpa [#allocation6], 0 }
   0x3   :  { %12 = vsyncpa [#allocation4], 0 }
   0x4   :  { %14 = vsyncpa [#allocation4 + $0x1], 0  ;;  %s882_s12 = smov 0   ;;  %s884_s13 = smov 0  }
   0x5   :  { %s886_s14 = smov 0   ;;  %s888_s15 = smov 0  }
   0x6 LB: > { %s903_s16 = sadd.s32 4294967295, %s850_s15   ;;  %s494_s17 = sadd.s32 4294967294, %s850_s15   ;;  %s850_s15 = sphi %s888_s15, %s1178_s15   ;;  %s846_s14 = sphi %s886_s14, %s1177_s14   ;;  %s842_s13 = sphi %s884_s13, %s1176_s13   ;;  %s838_s12 = sphi %s882_s12, %s1175_s12  }
   0x7   : > { %p40_p0 = scmp.ne.s32.totalorder %s842_s13, %s838_s12  ;;  %p1159_p1 = scmp.eq.s32.totalorder %s903_s16, 0 }
   0x8   : > { %p112_p3 = scmp.eq.s32.totalorder %s494_s17, 1  ;;  %p495_p5 = scmp.ge.s32.totalorder %s850_s15, 1 }
   0x9   : > { %p912_p4 = por %p1159_p1, %p40_p0  ;;  %p119_p7 = scmp.lt.s32.totalorder %s850_s15, 3 }
   0xa   : > { %p917_p6 = por %p112_p3, %p40_p0  ;;  %s852_s21 = smov [#allocation5]  }
   0xb   : > { %s1162_s18 = scalar_select %p912_p4, 1, 0 }
   0xc   : > { %s1163_s19 = scalar_select %p917_p6, 1, 0 }
   0xd   : > { %p922_p8 = pnand %p495_p5, %p119_p7  ;;  %s131_s22 = sshll.u32 %s852_s21, 4  ;;  %s926_s22 = int_to_ptr.vmem [resolvable:$true] %s131_s22 }
   0xe   : > { %s853_s24 = smov [#allocation7]   ;;  %s694_s28 = scalar_lea.hbm %s1156_s1, 4096 }
   0xf   : > { %p633_p9 = pneg %p922_p8  ;;  %s145_s25 = sshll.u32 %s853_s24, 4  ;;  %s937_s25 = int_to_ptr.vmem [resolvable:$true] %s145_s25 }
  0x10   : > { %p695_p12 = scmp.ne.s32.totalorder %s1156_s1, %s694_s28  ;;  %p701_p5 = scmp.lt.u32.totalorder %s694_s28, %s1156_s1 }
  0x11   : > { %p933_p11 = pnand %p633_p9, %p1159_p1 }
  0x13   : > { %p696_p13 = pneg %p933_p11 }
  0x15   : > { %p697_p0 = pnand %p696_p13, %p695_p12 }
  0x17   : > { %p698_p3 = pneg %p697_p0 }
  0x19   : > { %p703_p7 = pnand %p701_p5, %p698_p3 }
  0x1b   : > { %706 = shalt.err (!%p703_p7)
}
  0x1c   : > { %s707_s6 = scalar_lea.vmem %s926_s22, 4096  ;;  %p715_p2 = scmp.lt.s32.totalorder %s926_s22, %s926_s22 }
  0x1d   : > { %p708_p9 = scmp.ne.s32.totalorder %s926_s22, %s707_s6  ;;  %p716_p12 = scmp.lt.s32.totalorder %s707_s6, %s707_s6 }
  0x1f   : > { %p710_p10 = pnand %p708_p9, %p696_p13  ;;  %p717_p0 = por %p716_p12, %p715_p2 }
  0x21   : > { %p711_p1 = pneg %p710_p10 }
  0x23   : > { %p718_p6 = pnand %p717_p0, %p711_p1 }
  0x25   : > { %721 = shalt.err (!%p718_p6)
}
  0x26   : > { %s854_s7 = smov 128   ;;  %s855_s8 = smov 8  }
  0x27   : > { %636 = dma.hbm_to_vmem [thread:$0]  (!%p933_p11), %s1156_s1, 4096, %s926_s22, [#allocation6], %s854_s7, %s854_s7, %s855_s8  }
  0x28   : > { %s722_s21 = scalar_lea.hbm %s1157_s2, 16 }
  0x29   : > { %p723_p2 = scmp.ne.s32.totalorder %s1157_s2, %s722_s21  ;;  %p729_p10 = scmp.lt.u32.totalorder %s722_s21, %s1157_s2 }
  0x2b   : > { %p725_p1 = pnand %p723_p2, %p696_p13 }
  0x2d   : > { %p726_p6 = pneg %p725_p1 }
  0x2f   : > { %p731_p3 = pnand %p729_p10, %p726_p6 }
  0x31   : > { %734 = shalt.err (!%p731_p3)
}
  0x32   : > { %s735_s22 = scalar_lea.vmem %s937_s25, 16  ;;  %s742_s29 = scalar_lea.vmem %s937_s25, 32 }
  0x33   : > { %p736_p5 = scmp.ne.s32.totalorder %s937_s25, %s735_s22  ;;  %p743_p12 = scmp.lt.s32.totalorder %s937_s25, %s937_s25 }
  0x34   : > { %p744_p0 = scmp.lt.s32.totalorder %s742_s29, %s735_s22 }
  0x35   : > { %p738_p7 = pnand %p736_p5, %p696_p13 }
  0x36   : > { %p745_p2 = por %p744_p0, %p743_p12 }
  0x37   : > { %p739_p9 = pneg %p738_p7 }
  0x39   : > { %p746_p1 = pnand %p745_p2, %p739_p9 }
  0x3b   : > { %749 = shalt.err (!%p746_p1)
}
  0x3c   : > { %639 = dma.hbm_to_vmem [thread:$0]  (!%p933_p11), %s1157_s2, 16, %s937_s25, [#allocation6]  }
  0x3d   : > { %s993_s5 = sadd.s32 1, %s850_s15   ;;  %s27_s23 = sadd.s32 1, %s846_s14 }
  0x3e   : > { %s24_s6 = ssub.s32 %s850_s15, %s993_s5  ;;  %p34_p13 = scmp.ne.s32.totalorder %s846_s14, %s842_s13 }
  0x3f   : > { %p25_p6 = scmp.eq.s32.totalorder %s24_s6, 0  ;;  %p35_p10 = scmp.eq.s32.totalorder %s850_s15, 0 }
  0x40   : > { %p1166_p3 = scmp.eq.s32.totalorder %s903_s16, 1  ;;  %p650_p7 = scmp.lt.s32.totalorder %s850_s15, 2 }
  0x41   : > { %s1009_s8 = scalar_select %p25_p6, %s846_s14, %s27_s23  }
  0x42   : > { %p1003_p5 = por %p1166_p3, %p34_p13  ;;  %p36_p9 = por %p35_p10, %p34_p13 }
  0x43   : > { %s156_s9 = sand.u32 1, %s846_s14   ;;  %s515_s25 = sshll.u32 %s850_s15, 11 }
  0x44   : > { %s1167_s7 = scalar_select %p1003_p5, 1, 0 }
  0x45   : > { %s499_s10 = sshll.u32 %s156_s9, 7  ;;  %s1016_s21 = scalar_lea.hbm %s1155_s0, %s515_s25 }
  0x46   : > { %s160_s24 = scalar_lea.vmem [#allocation2], %s499_s10  ;;  %p1020_p11 = pnand %p650_p7, %p36_p9 }
  0x47   : > { %s168_s26 = sshll.u32 %s160_s24, 4  ;;  %s1024_s28 = scalar_lea.sflag [#allocation3], %s156_s9  ;;  %s1018_s26 = int_to_ptr.vmem [resolvable:$true] %s168_s26 }
  0x48   : > { %s750_s22 = scalar_lea.hbm %s1016_s21, 2048  ;;  %p752_p0 = pneg %p1020_p11 }
  0x49   : > { %p751_p12 = scmp.ne.s32.totalorder %s1016_s21, %s750_s22  ;;  %s755_s4 = scalar_lea.hbm %s1155_s0, 4096 }
  0x4a   : > { %p756_p13 = scmp.lt.u32.totalorder %s1016_s21, %s1155_s0  ;;  %p757_p6 = scmp.lt.u32.totalorder %s755_s4, %s750_s22 }
  0x4b   : > { %p753_p2 = pnand %p752_p0, %p751_p12  ;;  %p759_p3 = scmp.lt.u32.totalorder %s750_s22, %s1016_s21 }
  0x4c   : > { %p758_p10 = por %p757_p6, %p756_p13 }
  0x4d   : > { %p754_p1 = pneg %p753_p2 }
  0x4e   : > { %p760_p7 = por %p759_p3, %p758_p10 }
  0x50   : > { %p761_p9 = pnand %p760_p7, %p754_p1 }
  0x52   : > { %764 = shalt.err (!%p761_p9)
}
  0x53   : > { %s765_s9 = scalar_lea.vmem %s1018_s26, 2048  ;;  %s856_s10 = smov [#allocation2]  }
  0x54   : > { %p766_p12 = scmp.ne.s32.totalorder %s1018_s26, %s765_s9  ;;  %s770_s25 = sshll.u32 %s856_s10, 4  ;;  %s771_s25 = int_to_ptr.vmem [resolvable:$false] %s770_s25 }
  0x55   : > { %s772_s11 = scalar_lea.vmem %s771_s25, 4096  ;;  %p773_p4 = scmp.lt.s32.totalorder %s1018_s26, %s771_s25 }
  0x56   : > { %p768_p2 = pnand %p766_p12, %p752_p0  ;;  %p774_p13 = scmp.lt.s32.totalorder %s772_s11, %s765_s9 }
  0x58   : > { %p769_p5 = pneg %p768_p2  ;;  %p775_p6 = por %p774_p13, %p773_p4 }
  0x5a   : > { %p776_p10 = pnand %p775_p6, %p769_p5 }
  0x5c   : > { %779 = shalt.err (!%p776_p10)
}
  0x5d   : > { %s857_s17 = smov 256   ;;  %s858_s24 = smov 16  }
  0x5e   : > { %643 = dma.hbm_to_vmem [thread:$0]  (!%p1020_p11), %s1016_s21, 2048, %s1018_s26, %s1024_s28, %s857_s17, %s857_s17, %s858_s24  }
  0x5f   : > { %180 = sbr.rel (%p922_p8) target bundleno = 385 (0x181), region = 32  ;;  %s1055_s22 = sand.u32 (!%p922_p8), 1, %s842_s13  }
  0x60   : > { %s504_s29 = sshll.u32 (!%p922_p8), %s1055_s22, 7  ;;  %s183_s30 = scalar_lea.sflag (!%p922_p8), [#allocation3], %s1055_s22 }
  0x61   : > { %s1059_s4 = scalar_lea.vmem (!%p922_p8), [#allocation2], %s504_s29  ;;  %p1169_p4 = scmp.ne.s32.totalorder (!%p922_p8), %s1162_s18, 0 }
  0x66   : > { %825 = dma.done.wait (%p1169_p4), %s183_s30, 2048  }
  0x67   : > { %827 = vsyncadd (%p1169_p4), %s183_s30, 4294965248  ;;  %p1170_p5 = scmp.eq.s32.totalorder %s903_s16, 0 }
  0x69   : > { %829 = dma.done.wait (%p1170_p5), [#allocation6], 4112   ;;  %p1171_p8 = pmov %p1170_p5 }
  0x6a   : > { %v251_v0 = vld [vmem:[#allocation5 + $0x80] sm:$0xff]  ;;  %v252_v1 = vld [vmem:[#allocation5 + $0x88] sm:$0xff]  ;;  %v253_v5 = vld [vmem:[#allocation5 + $0x90] sm:$0xff]  ;;  %s507_s18 = sshll.u32 %s1055_s22, 6  ;;  %vm379_vm0 = vcmask 261120   ;;  %s516_s21 = sshll.u32 %s903_s16, 10 }
  0x6b   : > { %831 = vsyncadd (%p1171_p8), [#allocation6], 4294963184  ;;  %v235_v2 = vld [vmem:[#allocation5] sm:$0xff]  ;;  %v573_v3 = vpack.c.bf16 %v252_v1, %v251_v0  ;;  %v236_v4 = vld [vmem:[#allocation5 + $0x8] sm:$0xff]  ;;  %s1086_s20 = scalar_lea.vmem [#allocation8], %s507_s18  ;;  %s1105_s23 = scalar_lea.hbm %s1158_s3, %s516_s21 }
  0x6c   : > { %v254_v6 = vld [vmem:[#allocation5 + $0x98] sm:$0xff]  ;;  %v575_v7 = vpack.c.bf16 %v236_v4, %v235_v2  ;;  %v237_v9 = vld [vmem:[#allocation5 + $0x10] sm:$0xff]  ;;  %v255_v11 = vld [vmem:[#allocation5 + $0xa0] sm:$0xff]  ;;  %s402_s26 = sshll.u32 %s1086_s20, 4  ;;  %s389_s16 = scalar_lea.sflag [#allocation4], %s1055_s22  ;;  %s1107_s26 = int_to_ptr.vmem [resolvable:$true] %s402_s26 }
  0x6d   : > { %v577_v8 = vpack.c.bf16 %v254_v6, %v253_v5  ;;  %v238_v10 = vld [vmem:[#allocation5 + $0x18] sm:$0xff]  ;;  %574 = vmatprep.subr.bf16.mxu0 %v573_v3  ;;  %605 = vmatprep.subr.bf16.mxu1 %v573_v3  ;;  %v256_v12 = vld [vmem:[#allocation5 + $0xa8] sm:$0xff]  ;;  %v239_v15 = vld [vmem:[#allocation5 + $0x20] sm:$0xff]  ;;  %s780_s6 = scalar_lea.vmem %s1107_s26, 1024  ;;  %p1172_p0 = scmp.ne.s32.totalorder %s1167_s7, 0 }
  0x6e   : > { %576 = vmatpush3.bf16.msra.mxu0 %v575_v7  ;;  %613 = vmatpush3.bf16.msra.mxu1 %v575_v7  ;;  %v579_v13 = vpack.c.bf16 %v238_v10, %v237_v9  ;;  %v581_v14 = vpack.c.bf16 %v256_v12, %v255_v11  ;;  %v240_v16 = vld [vmem:[#allocation5 + $0x28] sm:$0xff]  ;;  %v257_v17 = vld [vmem:[#allocation5 + $0xb0] sm:$0xff]  ;;  %v258_v18 = vld [vmem:[#allocation5 + $0xb8] sm:$0xff]  ;;  %p781_p11 = scmp.ne.s32.totalorder %s1107_s26, %s780_s6  ;;  %s859_s9 = smov [#allocation8]  }
  0x6f   : > { %578 = vmatprep.subr.bf16.mxu0 %v577_v8  ;;  %606 = vmatprep.subr.bf16.mxu1 %v577_v8  ;;  %v583_v19 = vpack.c.bf16 %v240_v16, %v239_v15  ;;  %v585_v20 = vpack.c.bf16 %v258_v18, %v257_v17  ;;  %v241_v21 = vld [vmem:[#allocation5 + $0x30] sm:$0xff]  ;;  %v242_v22 = vld [vmem:[#allocation5 + $0x38] sm:$0xff]  ;;  %v259_v23 = vld [vmem:[#allocation5 + $0xc0] sm:$0xff]  ;;  %s784_s10 = sshll.u32 %s859_s9, 4  ;;  %s785_s10 = int_to_ptr.vmem [resolvable:$false] %s784_s10 }
  0x70   : > { %v260_v24 = vld [vmem:[#allocation5 + $0xc8] sm:$0xff]  ;;  %v587_v27 = vpack.c.bf16 %v242_v22, %v241_v21  ;;  %v243_v29 = vld [vmem:[#allocation5 + $0x40] sm:$0xff]  ;;  %v261_v31 = vld [vmem:[#allocation5 + $0xd0] sm:$0xff]  ;;  %p782_p1 = pnand %p781_p11, %p1172_p0  ;;  %s786_s25 = scalar_lea.vmem %s785_s10, 2048 }
  0x71   : > { %v220_v25 = vld [vmem:[%s1059_s4 + $0x8] sm:$0xff]  ;;  %v589_v28 = vpack.c.bf16 %v260_v24, %v259_v23  ;;  %v262_v32 = vld [vmem:[#allocation5 + $0xd8] sm:$0xff]  ;;  %v245_v35 = vld [vmem:[#allocation5 + $0x50] sm:$0xff]  ;;  %p787_p7 = scmp.lt.s32.totalorder %s1107_s26, %s785_s10  ;;  %p788_p9 = scmp.lt.s32.totalorder %s786_s25, %s780_s6 }
  0x72   : > { %580 = vmatpush3.bf16.msra.mxu0 %v579_v13  ;;  %614 = vmatpush3.bf16.msra.mxu1 %v579_v13  ;;  %v228_v26 = vld [vmem:[%s1059_s4 + $0x48] sm:$0xff]  ;;  %v593_v34 = vpack.c.bf16 %v262_v32, %v261_v31  ;;  %v246_v36 = vld [vmem:[#allocation5 + $0x58] sm:$0xff]  ;;  %v263_v37 = vld [vmem:[#allocation5 + $0xe0] sm:$0xff]  ;;  %p783_p3 = pneg %p782_p1 }
  0x73   : > { %582 = vmatprep.subr.bf16.mxu0 %v581_v14  ;;  %607 = vmatprep.subr.bf16.mxu1 %v581_v14  ;;  %v244_v30 = vld [vmem:[#allocation5 + $0x48] sm:$0xff]  ;;  %v595_v39 = vpack.c.bf16 %v246_v36, %v245_v35  ;;  %v247_v41 = vld [vmem:[#allocation5 + $0x60] sm:$0xff]  ;;  %v265_v43 = vld [vmem:[#allocation5 + $0xf0] sm:$0xff]  ;;  %p789_p12 = por %p788_p9, %p787_p7 }
  0x74   : > { %338 = vmatprep.mubr.f32.mxu0 %v220_v25  ;;  %358 = vmatprep.mubr.f32.mxu1 %v228_v26  ;;  %v591_v33 = vpack.c.bf16 %v244_v30, %v243_v29  ;;  %v264_v38 = vld [vmem:[#allocation5 + $0xe8] sm:$0xff]  ;;  %v266_v44 = vld [vmem:[#allocation5 + $0xf8] sm:$0xff]  ;;  %v249_v47 = vld [vmem:[#allocation5 + $0x70] sm:$0xff] }
  0x75   : > { %v597_v40 = vpack.c.bf16 %v264_v38, %v263_v37  ;;  %v248_v42 = vld [vmem:[#allocation5 + $0x68] sm:$0xff]  ;;  %v601_v46 = vpack.c.bf16 %v266_v44, %v265_v43  ;;  %v250_v48 = vld [vmem:[#allocation5 + $0x78] sm:$0xff]  ;;  %v219_v50 = vld [vmem:[%s1059_s4] sm:$0xff]  ;;  %p790_p2 = pnand %p789_p12, %p783_p3 }
  0x76   : > { %584 = vmatpush3.bf16.msra.mxu0 %v583_v19  ;;  %615 = vmatpush3.bf16.msra.mxu1 %v583_v19  ;;  %v599_v45 = vpack.c.bf16 %v248_v42, %v247_v41  ;;  %v603_v49 = vpack.c.bf16 %v250_v48, %v249_v47  ;;  %v227_v51 = vld [vmem:[%s1059_s4 + $0x40] sm:$0xff]  ;;  %v222_v52 = vld [vmem:[%s1059_s4 + $0x18] sm:$0xff]  ;;  %v221_v54 = vld [vmem:[%s1059_s4 + $0x10] sm:$0xff] }
  0x77   : > { %586 = vmatprep.subr.bf16.mxu0 %v585_v20  ;;  %608 = vmatprep.subr.bf16.mxu1 %v585_v20  ;;  %v230_v53 = vld [vmem:[%s1059_s4 + $0x58] sm:$0xff]  ;;  %v229_v55 = vld [vmem:[%s1059_s4 + $0x50] sm:$0xff]  ;;  %v224_v56 = vld [vmem:[%s1059_s4 + $0x28] sm:$0xff] }
  0x78   : > { %v232_v57 = vld [vmem:[%s1059_s4 + $0x68] sm:$0xff]  ;;  %v223_v58 = vld [vmem:[%s1059_s4 + $0x20] sm:$0xff]  ;;  %v226_v60 = vld [vmem:[%s1059_s4 + $0x38] sm:$0xff] }
  0x79   : > { %v231_v59 = vld [vmem:[%s1059_s4 + $0x60] sm:$0xff]  ;;  %v234_v61 = vld [vmem:[%s1059_s4 + $0x78] sm:$0xff]  ;;  %v225_v62 = vld [vmem:[%s1059_s4 + $0x30] sm:$0xff] }
  0x7a   : > { %588 = vmatpush3.bf16.msra.mxu0 %v587_v27  ;;  %616 = vmatpush3.bf16.msra.mxu1 %v587_v27  ;;  %v233_v63 = vld [vmem:[%s1059_s4 + $0x70] sm:$0xff]  ;;  %v508_v2 = vld [vmem:[#allocation7] ss:$0 sm:$0xff] }
  0x7b   : > { %590 = vmatprep.subr.bf16.mxu0 %v589_v28  ;;  %609 = vmatprep.subr.bf16.mxu1 %v589_v28 }
  0x7e   : > { %592 = vmatpush3.bf16.msra.mxu0 %v591_v33  ;;  %617 = vmatpush3.bf16.msra.mxu1 %v591_v33 }
  0x7f   : > { %594 = vmatprep.subr.bf16.mxu0 %v593_v34  ;;  %610 = vmatprep.subr.bf16.mxu1 %v593_v34 }
  0x82   : > { %596 = vmatpush3.bf16.msra.mxu0 %v595_v39  ;;  %618 = vmatpush3.bf16.msra.mxu1 %v595_v39 }
  0x83   : > { %598 = vmatprep.subr.bf16.mxu0 %v597_v40  ;;  %611 = vmatprep.subr.bf16.mxu1 %v597_v40 }
  0x86   : > { %600 = vmatpush3.bf16.msra.mxu0 %v599_v45  ;;  %619 = vmatpush3.bf16.msra.mxu1 %v599_v45 }
  0x87   : > { %602 = vmatprep.subr.bf16.mxu0 %v601_v46  ;;  %612 = vmatprep.subr.bf16.mxu1 %v601_v46 }
  0x8a   : > { %604 = vmatpush3.bf16.msra.mxu0 %v603_v49  ;;  %620 = vmatpush3.bf16.msra.mxu1 %v603_v49 }
  0x8d   : > { %339 = vmatmul.mubr.f32.vlgmr.msra.gmra.mrb[0].mxu0 %v219_v50  ;;  %359 = vmatmul.mubr.f32.vlgmr.msra.gmra.mrb[0].mxu1 %v227_v51 }
  0x8e   : > { %343 = vmatprep.mubr.f32.mxu0 %v222_v52  ;;  %363 = vmatprep.mubr.f32.mxu1 %v230_v53 }
  0x91   : > { %344 = vmatmul.mubr.f32.gmra.mrb[2].mxu0 %v221_v54  ;;  %364 = vmatmul.mubr.f32.gmra.mrb[2].mxu1 %v229_v55 }
  0x92   : > { %348 = vmatprep.mubr.f32.mxu0 %v224_v56  ;;  %368 = vmatprep.mubr.f32.mxu1 %v232_v57 }
  0x95   : > { %349 = vmatmul.mubr.f32.gmra.mrb[4].mxu0 %v223_v58  ;;  %369 = vmatmul.mubr.f32.gmra.mrb[4].mxu1 %v231_v59 }
  0x96   : > { %353 = vmatprep.mubr.f32.mxu0 %v226_v60  ;;  %373 = vmatprep.mubr.f32.mxu1 %v234_v61 }
  0x99   : > { %354 = vmatmul.mubr.f32.gmra.mrb[6].mxu0 %v225_v62  ;;  %374 = vmatmul.mubr.f32.gmra.mrb[6].mxu1 %v233_v63 }
 0x160   : > { %v549_v0 = vpop.f32.mrb[0].mxu0  ;;  %v561_v1 = vpop.f32.mrb[0].mxu1 }
 0x161   : > { %v550_v3 = vpop.f32.mrb[1].mxu0  ;;  %v562_v4 = vpop.f32.mrb[1].mxu1 }
 0x162   : > { %v551_v5 = vadd.f32 %v550_v3, %v549_v0  ;;  %v563_v6 = vadd.f32 %v562_v4, %v561_v1 }
 0x164   : > { %v341_v7 = vadd.f32 %v551_v5, %v508_v2  ;;  %v361_v8 = vadd.f32 %v563_v6, %v508_v2  ;;  %v552_v9 = vpop.f32.mrb[2].mxu0  ;;  %v564_v10 = vpop.f32.mrb[2].mxu1 }
 0x165   : > { %v553_v11 = vpop.f32.mrb[3].mxu0  ;;  %v565_v12 = vpop.f32.mrb[3].mxu1 }
 0x166   : > { %380 = vst.msk [vmem:[%s1086_s20] sm:$0xff] %vm379_vm0, %v341_v7  ;;  %384 = vst.msk [vmem:[%s1086_s20 + $0x20] sm:$0xff] %vm379_vm0, %v361_v8  ;;  %v554_v13 = vadd.f32 %v553_v11, %v552_v9  ;;  %v566_v14 = vadd.f32 %v565_v12, %v564_v10 }
 0x168   : > { %v346_v15 = vadd.f32 %v554_v13, %v508_v2  ;;  %v366_v16 = vadd.f32 %v566_v14, %v508_v2  ;;  %v555_v17 = vpop.f32.mrb[4].mxu0  ;;  %v567_v18 = vpop.f32.mrb[4].mxu1 }
 0x169   : > { %v556_v19 = vpop.f32.mrb[5].mxu0  ;;  %v568_v20 = vpop.f32.mrb[5].mxu1 }
 0x16a   : > { %381 = vst.msk [vmem:[%s1086_s20 + $0x8] sm:$0xff] %vm379_vm0, %v346_v15  ;;  %385 = vst.msk [vmem:[%s1086_s20 + $0x28] sm:$0xff] %vm379_vm0, %v366_v16  ;;  %v557_v21 = vadd.f32 %v556_v19, %v555_v17  ;;  %v569_v22 = vadd.f32 %v568_v20, %v567_v18 }
 0x16c   : > { %v351_v23 = vadd.f32 %v557_v21, %v508_v2  ;;  %v371_v24 = vadd.f32 %v569_v22, %v508_v2  ;;  %v558_v25 = vpop.f32.mrb[6].mxu0  ;;  %v570_v26 = vpop.f32.mrb[6].mxu1 }
 0x16d   : > { %v559_v27 = vpop.f32.mrb[7].mxu0  ;;  %v571_v28 = vpop.f32.mrb[7].mxu1 }
 0x16e   : > { %382 = vst.msk [vmem:[%s1086_s20 + $0x10] sm:$0xff] %vm379_vm0, %v351_v23  ;;  %386 = vst.msk [vmem:[%s1086_s20 + $0x30] sm:$0xff] %vm379_vm0, %v371_v24  ;;  %v560_v29 = vadd.f32 %v559_v27, %v558_v25  ;;  %v572_v30 = vadd.f32 %v571_v28, %v570_v26 }
 0x170   : > { %v356_v31 = vadd.f32 %v560_v29, %v508_v2  ;;  %v376_v32 = vadd.f32 %v572_v30, %v508_v2 }
 0x172   : > { %383 = vst.msk [vmem:[%s1086_s20 + $0x18] sm:$0xff] %vm379_vm0, %v356_v31  ;;  %387 = vst.msk [vmem:[%s1086_s20 + $0x38] sm:$0xff] %vm379_vm0, %v376_v32 }
 0x173   : > { %793 = shalt.err (!%p790_p2)
}
 0x174   : > { %s794_s11 = scalar_lea.hbm %s1105_s23, 1024  ;;  %s798_s29 = scalar_lea.hbm %s1158_s3, 2048 }
 0x175   : > { %p795_p13 = scmp.ne.s32.totalorder %s1105_s23, %s794_s11  ;;  %p799_p4 = scmp.lt.u32.totalorder %s1105_s23, %s1158_s3 }
 0x176   : > { %p800_p5 = scmp.lt.u32.totalorder %s798_s29, %s794_s11  ;;  %p802_p11 = scmp.lt.u32.totalorder %s794_s11, %s1105_s23 }
 0x177   : > { %p796_p6 = pnand %p795_p13, %p1172_p0 }
 0x178   : > { %p801_p8 = por %p800_p5, %p799_p4 }
 0x179   : > { %p797_p10 = pneg %p796_p6 }
 0x17a   : > { %p803_p1 = por %p802_p11, %p801_p8 }
 0x17c   : > { %p804_p3 = pnand %p803_p1, %p797_p10 }
 0x17e   : > { %807 = shalt.err (!%p804_p3)
}
 0x17f   : > { %s860_s18 = smov 128   ;;  %s861_s20 = smov 8  }
 0x180   : > { %631 = dma.vmem_to_hbm [thread:$0]  (%p1172_p0), %s1107_s26, 1024, %s1105_s23, %s389_s16, %s860_s18, %s860_s18, %s861_s20  }
 0x181 PF: > { %s417_s21 = sand.u32 1, %s838_s12   ;;  %p1173_p7 = scmp.ne.s32.totalorder %s1163_s19, 0 }
 0x182   : > { %p1174_p9 = scmp.ge.s32.totalorder %s850_s15, 2  ;;  %s418_s27 = scalar_lea.sflag [#allocation4], %s417_s21 }
 0x184   : > { %p645_p12 = pnand %p1174_p9, %p1173_p7 }
 0x186   : > { %833 = dma.done.wait (!%p645_p12), %s418_s27, 1024  }
 0x187   : > { %835 = vsyncadd (!%p645_p12), %s418_s27, 4294966272  ;;  %p17_p2 = scmp.ge.s32.totalorder %s993_s5, 4   ;;  %s1175_s12 = smov %s842_s13 }
 0x188   : > { %s1176_s13 = smov %s846_s14  ;;  %s1177_s14 = smov %s1009_s8 }
 0x189   : > { %s1178_s15 = smov %s993_s5  ;;  %19 = sbr.rel (!%p17_p2) target bundleno = 6 (0x6), region = 85 }
 0x190   :  { %423 = vsyncpa [#allocation3], 1 }
 0x191   :  { %425 = vsyncpa [#allocation3 + $0x1], 1 }
 0x192   :  { %426 = vsyncpa [#allocation6], 1 }
 0x193   :  { %427 = vsyncpa [#allocation4], 1 }
 0x194   :  { %429 = vsyncpa [#allocation4 + $0x1], 1 }

</bundles_post_ra>
